<compile_context>
chip_gen: v7x
topology: tpu7x:2x2x1
jax: 0.10.0
libtpu: 0.0.40
codegen_flags: <defaults>
</compile_context>

<pallas_src>
import functools
import math

import jax
import jax.numpy as jnp
from jax.experimental import pallas as pl
from jax.experimental.pallas import tpu as pltpu


_SUBLANE = {4: 8, 2: 16, 1: 32}   # dtype itemsize -> sublane tile multiple


@functools.lru_cache(maxsize=1)
def _bf16_prefers_f32() -> bool:
    """v5e has no bf16 VALU: compute bf16 inputs in f32 there (HBM unchanged)."""
    try:
        info = pltpu.get_tpu_info()
        name = str(getattr(info, "chip_version", info)).lower()
        return "v5" in name
    except Exception:
        return False


def _batcher_network(n: int):
    """Batcher odd-even-mergesort comparator network for power-of-two n.

    Returns a tuple of (distance k, lower positions) steps; every comparator in
    a step has the same distance, so a step costs 2 rolls + min + max + 2
    selects.  O(log^2 n) steps instead of n for odd-even transposition.
    """
    steps = []
    p = 1
    while p < n:
        k = p
        while k >= 1:
            lowers = []
            for j in range(k % p, n - k, 2 * k):
                for i in range(min(k, n - j - k)):
                    if (i + j) // (2 * p) == (i + j + k) // (2 * p):
                        lowers.append(i + j)
            if lowers:
                steps.append((k, tuple(lowers)))
            k //= 2
        p *= 2
    return tuple(steps)


def _member(pos, values):
    """(1, lane_w) boolean mask: pos is one of `values` (small static tuple)."""
    m = pos == values[0]
    for v in values[1:]:
        m = jnp.logical_or(m, pos == v)
    return m


def _groupsort_kernel(x_ref, o_ref, *, group_size, network, compute_dtype):
    """Sort each consecutive group of `group_size` lanes ascending (per row)."""
    x = x_ref[...]
    if compute_dtype is not None and x.dtype != compute_dtype:
        x = x.astype(compute_dtype)
    d = x_ref.shape[-1]

    # Lane-position masks at (1, lane_w): broadcast over the row (sublane) dim,
    # so mask construction costs ~one vreg of int work instead of a full block.
    pos = jax.lax.broadcasted_iota(jnp.int32, (1, d), 1) % group_size

    def exchange(x, k, is_lo, is_hi):
        right_nb = pltpu.roll(x, shift=d - k, axis=1)   # x[lane + k] at lane
        left_nb = pltpu.roll(x, shift=k, axis=1)        # x[lane - k] at lane
        lo = jnp.minimum(x, right_nb)
        hi = jnp.maximum(x, left_nb)
        # Row-edge / cross-group wraparound lanes are never selected: lower
        # positions always have pos + k < group_size, uppers have pos - k >= 0.
        return jnp.where(is_lo, lo, jnp.where(is_hi, hi, x))

    if group_size == 2:
        # MaxMin / OPLU: a single masked select (every lane is lower or upper).
        right_nb = pltpu.roll(x, shift=d - 1, axis=1)
        left_nb = pltpu.roll(x, shift=1, axis=1)
        x = jnp.where(pos == 0, jnp.minimum(x, right_nb),
                      jnp.maximum(x, left_nb))
    elif network is not None:
        # Power-of-two group size: Batcher odd-even-merge network.
        for k, lowers in network:
            is_lo = _member(pos, lowers)
            is_hi = _member(pos, tuple(l + k for l in lowers))
            x = exchange(x, k, is_lo, is_hi)
    else:
        # General group size: odd-even transposition, g passes, hoisted masks.
        even_lo = jnp.logical_and(pos % 2 == 0, pos < group_size - 1)
        even_hi = jnp.logical_and(pos % 2 == 1, pos > 0)
        odd_lo = jnp.logical_and(pos % 2 == 1, pos < group_size - 1)
        odd_hi = jnp.logical_and(pos % 2 == 0, pos > 0)
        masks = ((even_lo, even_hi), (odd_lo, odd_hi))
        for p in range(group_size):
            is_lo, is_hi = masks[p % 2]
            x = exchange(x, 1, is_lo, is_hi)

    o_ref[...] = x.astype(o_ref.dtype)


def groupsort(x: jax.Array, axis: int = -1, group_size: int = 2) -> jax.Array:
    g = int(group_size)
    if g <= 1 or x.size == 0:
        return x

    ndim = x.ndim
    axis = axis % ndim
    moved = axis != ndim - 1
    if moved:
        x = jnp.moveaxis(x, axis, -1)
    work_shape = x.shape
    if work_shape[-1] % g != 0:
        raise ValueError("sorted axis length must be divisible by group_size")

    dtype = x.dtype
    itemsize = jnp.dtype(dtype).itemsize
    sub = _SUBLANE.get(itemsize, 8)
    total = x.size

    upcast = dtype == jnp.bfloat16 and _bf16_prefers_f32()
    # ~4 MiB blocks: per-step fixed cost stays <10% of the HBM time even at
    # v7x's 3.2 TB/s; halved when upcasting (f32 temporaries from bf16 blocks).
    target_bytes = (2 if upcast else 4) * 1024 * 1024

    # Lane-dense row width: multiple of 128 (full, unmasked vst) and of g
    # (groups never straddle rows).  For power-of-two g this is exactly 128,
    # so every +/-k roll is a pure in-vreg XLU lane rotate.
    lane_w = (128 * g) // math.gcd(128, g)
    rows = pl.cdiv(total, lane_w)
    if total % lane_w == 0 and rows % sub == 0:
        rows_padded = rows                      # common case: pad-free
    else:
        rows_padded = pl.cdiv(rows, sub) * sub

    # Tile height: largest multiple of `sub` dividing rows_padded, under the
    # byte target, with >= 8 (even) grid steps when there is enough data
    # (v7x shards the "parallel" axis across its two TensorCores).
    min_steps = 8
    tm_cap = max(sub, (target_bytes // (lane_w * itemsize)) // sub * sub)
    if rows_padded >= min_steps * sub:
        tm_cap = min(tm_cap, max(sub, (rows_padded // min_steps) // sub * sub))
    tm = sub
    for cand in range(min(tm_cap, rows_padded), sub - 1, -sub):
        if rows_padded % cand == 0:
            tm = cand
            break
    if (rows_padded // tm) > 1 and (rows_padded // tm) % 2 == 1 \
            and tm % (2 * sub) == 0:
        tm //= 2                                # even step count for 2 TCs

    # Flatten; pad only when the shape genuinely does not tile.  total and
    # lane_w are both multiples of g, so padded zeros form whole groups that
    # sort independently and are sliced off afterwards.
    flat = x.reshape(-1)
    pad = rows_padded * lane_w - total
    if pad:
        # TODO(synk): process the ragged tail in a separate tiny call instead
        # of materializing a padded copy (rare for typical DL shapes).
        flat = jnp.concatenate([flat, jnp.zeros((pad,), dtype=dtype)])
    x2 = flat.reshape(rows_padded, lane_w)

    if g == 2 or (g & (g - 1)) != 0:
        network = None                          # single-select / transposition
    else:
        network = _batcher_network(g)           # O(log^2 g) passes

    kernel = functools.partial(
        _groupsort_kernel, group_size=g, network=network,
        compute_dtype=jnp.float32 if upcast else None)

    out = pl.pallas_call(
        kernel,
        out_shape=jax.ShapeDtypeStruct((rows_padded, lane_w), dtype),
        grid_spec=pltpu.PrefetchScalarGridSpec(
            num_scalar_prefetch=0,
            grid=(rows_padded // tm,),
            in_specs=[pl.BlockSpec((tm, lane_w), lambda i: (i, 0))],
            out_specs=pl.BlockSpec((tm, lane_w), lambda i: (i, 0)),
        ),
        input_output_aliases={0: 0},            # shape/dtype preserving op
        compiler_params=pltpu.CompilerParams(
            dimension_semantics=("parallel",),
            vmem_limit_bytes=48 * 1024 * 1024,
        ),
    )(x2)

    out_flat = out.reshape(-1)
    if pad:
        out_flat = out_flat[:total]
    y = out_flat.reshape(work_shape)
    if moved:
        y = jnp.moveaxis(y, -1, axis)
    return y


def _reference_groupsort(x, group_size, axis=-1):
    axis = axis % x.ndim
    x = jnp.moveaxis(x, axis, -1)
    shp = x.shape
    xr = x.reshape(shp[:-1] + (shp[-1] // group_size, group_size))
    y = jnp.sort(xr, axis=-1).reshape(shp)
    return jnp.moveaxis(y, -1, axis)


if __name__ == "__main__":
    key = jax.random.PRNGKey(0)
    ks = jax.random.split(key, 6)

    # Small forward-consistent shape: batch=4, seq=8, hidden=64, axis=-1.
    x = jax.random.normal(ks[0], (4, 8, 64), dtype=jnp.float32)
    for g in (2, 4, 8):   # g=2 single-select path, g=4/8 Batcher networks
        y = jax.block_until_ready(groupsort(x, axis=-1, group_size=g))
        assert y.shape == x.shape and y.dtype == x.dtype
        assert jnp.array_equal(y, _reference_groupsort(x, g)), f"g={g} mismatch"

    # Ragged total -> padded-tail path.
    xr = jax.random.normal(ks[1], (3, 40), dtype=jnp.float32)
    yr = jax.block_until_ready(groupsort(xr, group_size=2))
    assert jnp.array_equal(yr, _reference_groupsort(xr, 2)), "ragged mismatch"

    # bf16 (sublane multiple 16), native dtype on v6e/v7x, f32 upcast on v5e.
    xb = jax.random.normal(ks[2], (8, 256), dtype=jnp.bfloat16)
    yb = jax.block_until_ready(groupsort(xb, group_size=2))
    assert yb.dtype == jnp.bfloat16
    assert jnp.array_equal(yb, _reference_groupsort(xb, 2)), "bf16 mismatch"

    # Non-power-of-two group size -> odd-even transposition path (lane_w=384).
    x3 = jax.random.normal(ks[3], (5, 48), dtype=jnp.float32)
    y3 = jax.block_until_ready(groupsort(x3, group_size=3))
    assert jnp.array_equal(y3, _reference_groupsort(x3, 3)), "g=3 mismatch"

    # Non-last axis (wrapper moveaxis path).
    xa = jax.random.normal(ks[4], (4, 32, 6), dtype=jnp.float32)
    ya = jax.block_until_ready(groupsort(xa, axis=1, group_size=2))
    assert jnp.array_equal(ya, _reference_groupsort(xa, 2, axis=1)), "axis mism"

    # Medium 2-D shape -> multi-step, even-count grid (pad-free divisor tiling).
    xm = jax.random.normal(ks[5], (64, 512), dtype=jnp.float32)
    ym = jax.block_until_ready(groupsort(xm, group_size=4))
    assert jnp.array_equal(ym, _reference_groupsort(xm, 4)), "medium mismatch"

    print("KERNEL_OK")
</pallas_src>

<mosaic_0001>
module attributes {stable_mosaic.version = 11 : i64} {
  func.func @_groupsort_kernel(%arg0: i32, %arg1: memref<16x128xf32, #tpu.memory_space<vmem>>, %arg2: memref<16x128xf32, #tpu.memory_space<vmem>>) attributes {dimension_semantics = [#tpu.dimension_semantics<parallel>], iteration_bounds = array<i64: 1>, scalar_prefetch = 0 : i64, scratch_operands = 0 : i64, tpu.core_type = #tpu.core_type<tc>, window_params = [{transform_indices = @transform_0, window_bounds = array<i64: 16, 128>}, {transform_indices = @transform_1, window_bounds = array<i64: 16, 128>}]} {
    %c0 = arith.constant 0 : index
    %c0_0 = arith.constant 0 : index
    %0 = vector.load %arg1[%c0, %c0_0] : memref<16x128xf32, #tpu.memory_space<vmem>>, vector<16x128xf32>
    %1 = tpu.iota {dimensions = array<i32: 1>} : vector<1x128xi32>
    %c2_i32 = arith.constant 2 : i32
    %c0_i32 = arith.constant 0 : i32
    %2 = arith.cmpi eq, %c2_i32, %c0_i32 : i32
    %c1_i32 = arith.constant 1 : i32
    %3 = arith.select %2, %c1_i32, %c2_i32 : i32
    %4 = vector.broadcast %3 : i32 to vector<1x128xi32>
    %5 = arith.remsi %1, %4 : vector<1x128xi32>
    %c0_i32_1 = arith.constant 0 : i32
    %6 = vector.broadcast %c0_i32_1 : i32 to vector<1x128xi32>
    %7 = arith.cmpi ne, %5, %6 : vector<1x128xi32>
    %c0_i32_2 = arith.constant 0 : i32
    %8 = vector.broadcast %c0_i32_2 : i32 to vector<1x128xi32>
    %9 = arith.cmpi slt, %5, %8 : vector<1x128xi32>
    %c0_i32_3 = arith.constant 0 : i32
    %10 = arith.cmpi slt, %3, %c0_i32_3 : i32
    %11 = vector.broadcast %10 : i1 to vector<1x128xi1>
    %12 = vector.broadcast %11 : vector<1x128xi1> to vector<1x128xi1>
    %13 = arith.xori %9, %12 : vector<1x128xi1>
    %14 = arith.andi %13, %7 : vector<1x128xi1>
    %15 = vector.broadcast %3 : i32 to vector<1x128xi32>
    %16 = arith.addi %5, %15 : vector<1x128xi32>
    %17 = arith.select %14, %16, %5 : vector<1x128xi1>, vector<1x128xi32>
    %c127_i32 = arith.constant 127 : i32
    %18 = tpu.dynamic_rotate %0 by %c127_i32 dim 1 : vector<16x128xf32>, i32 -> vector<16x128xf32>
    %c1_i32_4 = arith.constant 1 : i32
    %19 = tpu.dynamic_rotate %0 by %c1_i32_4 dim 1 : vector<16x128xf32>, i32 -> vector<16x128xf32>
    %c0_i32_5 = arith.constant 0 : i32
    %20 = vector.broadcast %c0_i32_5 : i32 to vector<1x128xi32>
    %21 = arith.cmpi eq, %17, %20 : vector<1x128xi32>
    %22 = arith.minimumf %0, %18 : vector<16x128xf32>
    %23 = arith.maximumf %0, %19 : vector<16x128xf32>
    %24 = vector.shape_cast %21 : vector<1x128xi1> to vector<1x128xi1>
    %25 = vector.broadcast %24 : vector<1x128xi1> to vector<16x128xi1>
    %26 = arith.select %25, %22, %23 : vector<16x128xi1>, vector<16x128xf32>
    %c0_6 = arith.constant 0 : index
    %c0_7 = arith.constant 0 : index
    %27 = vector.load %arg2[%c0_6, %c0_7] : memref<16x128xf32, #tpu.memory_space<vmem>>, vector<16x128xf32>
    tpu.vector_store %arg2[%c0_6, %c0_7], %26 {strides = array<i32>} : memref<16x128xf32, #tpu.memory_space<vmem>>, vector<16x128xf32>,
    return
  }
  func.func @transform_0(%arg0: i32) -> (i32, i32) {
    %c0_i32 = arith.constant 0 : i32
    %c0_i32_0 = arith.constant 0 : i32
    return %arg0, %c0_i32 : i32, i32
  }
  func.func @transform_1(%arg0: i32) -> (i32, i32) {
    %c0_i32 = arith.constant 0 : i32
    %c0_i32_0 = arith.constant 0 : i32
    return %arg0, %c0_i32 : i32, i32
  }
}

</mosaic_0001>

<bundles_post_ra>
// kernel: tpu_custom_call.1
= control target key start
LH: loop header
LB: loop body
LE: loop exit
PB: predicated region body
PF: predicated region fallthrough
CT: control target
= control target key end

     0   :  { %6 = vsyncpa [#allocation3], 0  ;;  %s175_s0 = inlined_call_operand.hbm [shape: f32[16,128], index: 0, kind: input, shape index: {}, may-alias: {0,1}]   ;;  %s176_s1 = inlined_call_operand.hbm [shape: f32[16,128], index: 1, kind: output, shape index: {}, may-alias: {0,1}]  }
   0x1   :  { %7 = vsyncpa [#allocation4], 0  ;;  %s129_s6 = smov [#allocation2]   ;;  %s81_s10 = scalar_lea.hbm %s175_s0, 256 }
   0x2   :  { %s13_s7 = sshll.u32 %s129_s6, 4  ;;  %p82_p0 = scmp.ne.s32.totalorder %s175_s0, %s81_s10  ;;  %s14_s7 = int_to_ptr.vmem [resolvable:$true] %s13_s7 }
   0x3   :  { %p85_p1 = scmp.lt.u32.totalorder %s81_s10, %s175_s0 }
   0x5   :  { %p87_p2 = pnand %p85_p1, %p82_p0 }
   0x7   :  { %90 = shalt.err (!%p87_p2)
}
   0x8   :  { %s91_s15 = scalar_lea.vmem %s14_s7, 256  ;;  %p96_p4 = scmp.lt.s32.totalorder %s14_s7, %s14_s7 }
   0x9   :  { %p92_p3 = scmp.ne.s32.totalorder %s14_s7, %s91_s15  ;;  %p97_p5 = scmp.lt.s32.totalorder %s91_s15, %s91_s15 }
   0xb   :  { %p98_p6 = por %p97_p5, %p96_p4 }
   0xd   :  { %p99_p7 = pnand %p98_p6, %p92_p3 }
   0xf   :  { %102 = shalt.err (!%p99_p7)
}
  0x10   :  { %s130_s16 = smov 128   ;;  %s131_s17 = smov 8  }
  0x11   :  { %19 = dma.hbm_to_vmem [thread:$0]  %s175_s0, 256, %s14_s7, [#allocation3], %s130_s16, %s130_s16, %s131_s17  }
  0x12   :  { %125 = dma.done.wait [#allocation3], 256  }
  0x13   :  { %126 = vsyncadd [#allocation3], 4294967040  ;;  %v23_v0 = vld [vmem:[#allocation2] sm:$0xff]  ;;  %s132_s20 = smov 1   ;;  %s133_s21 = smov 127   ;;  %v24_v1 = vld [vmem:[#allocation2 + $0x8] sm:$0xff]  ;;  %v25_v2 = vlaneseq }
  0x14   :  { %43 = vrot.lane.b32.xlu1 %v23_v0, %s132_s20  ;;  %39 = vrot.lane.b32.xlu0 %v23_v0, %s133_s21  ;;  %s134_s0 = smov [#allocation5]  }
  0x15   :  { %v26_v3 = vand.u32 127, %v25_v2  ;;  %s63_s22 = sshll.u32 %s134_s0, 4  ;;  %s64_s22 = int_to_ptr.vmem [resolvable:$true] %s63_s22 }
  0x16   :  { %s103_s23 = scalar_lea.vmem %s64_s22, 256  ;;  %p108_p9 = scmp.lt.s32.totalorder %s64_s22, %s64_s22 }
  0x17   :  { %v31_v4 = vand.u32 1, %v26_v3  ;;  %p104_p8 = scmp.ne.s32.totalorder %s64_s22, %s103_s23  ;;  %p109_p10 = scmp.lt.s32.totalorder %s103_s23, %s103_s23 }
  0x18   :  { %45 = vrot.lane.b32.xlu1 %v24_v1, %s132_s20  ;;  %41 = vrot.lane.b32.xlu0 %v24_v1, %s133_s21 }
  0x19   :  { %vm47_vm0 = vcmp.eq.s32.totalorder %v31_v4, 0  ;;  %p110_p11 = por %p109_p10, %p108_p9 }
  0x1b   :  { %p111_p12 = pnand %p110_p11, %p104_p8 }
  0x86   :  { %v44_v5 = vpop.permute.xlu1 %43  ;;  %v40_v6 = vpop.permute.xlu0 %39 }
  0x87   :  { %v50_v7 = vmax.f32 %v23_v0, %v44_v5  ;;  %v48_v8 = vmin.f32 %v23_v0, %v40_v6 }
  0x89   :  { %v54_v9 = vsel %vm47_vm0, %v48_v8, %v50_v7 }
  0x8a   :  { %v46_v10 = vpop.permute.xlu1 %45  ;;  %v42_v11 = vpop.permute.xlu0 %41  ;;  %56 = vst [vmem:[#allocation5] sm:$0xff] %v54_v9 }
  0x8b   :  { %v51_v12 = vmax.f32 %v24_v1, %v46_v10  ;;  %v49_v13 = vmin.f32 %v24_v1, %v42_v11 }
  0x8d   :  { %v55_v14 = vsel %vm47_vm0, %v49_v13, %v51_v12 }
  0x8e   :  { %57 = vst [vmem:[#allocation5 + $0x8] sm:$0xff] %v55_v14 }
  0x8f   :  { %114 = shalt.err (!%p111_p12)
}
  0x90   :  { %s115_s26 = scalar_lea.hbm %s176_s1, 256 }
  0x91   :  { %p116_p13 = scmp.ne.s32.totalorder %s176_s1, %s115_s26  ;;  %p119_p0 = scmp.lt.u32.totalorder %s115_s26, %s176_s1 }
  0x93   :  { %p121_p1 = pnand %p119_p0, %p116_p13 }
  0x95   :  { %124 = shalt.err (!%p121_p1)
}
  0x96   :  { %69 = dma.vmem_to_hbm [thread:$0]  %s64_s22, 256, %s176_s1, [#allocation4], %s130_s16, %s130_s16, %s131_s17  }
  0x97   :  { %127 = dma.done.wait [#allocation4], 256  }
  0x98   :  { %128 = vsyncadd [#allocation4], 4294967040 }
  0x99   :  { %73 = vsyncpa [#allocation3], 1 }
  0x9a   :  { %74 = vsyncpa [#allocation4], 1 }

</bundles_post_ra>
